<compile_context>
chip_gen: v5e
topology: v5e:2x2
jax: 0.10.0
libtpu: 0.0.40
codegen_flags: <defaults>
</compile_context>

<pallas_src>
import jax
import jax.numpy as jnp
from jax.experimental import pallas as pl
from jax.experimental.pallas import tpu as pltpu


def down_kernel(x_ref, w_ref, b_ref, o_ref):
    # x_ref: (4, Cin, TM)   -- 4 pool taps, channels on sublanes, spatial on lanes
    # w_ref: (Cout, Cin)    -- PyTorch Conv2d 1x1 weight layout (squeezed)
    # b_ref: (Cout, 1)
    # o_ref: (Cout, TM)     -- lane-dense output slab (NCHW-flat)
    b = b_ref[...]                       # hoisted above the projection

    # MaxPool2d(kernel_size=2, stride=2): pure VPU max over the tap axis,
    # full-tile contiguous reads (no strided slicing, no XLU relayout).
    pooled = jnp.maximum(jnp.maximum(x_ref[0], x_ref[1]),
                         jnp.maximum(x_ref[2], x_ref[3]))      # (Cin, TM)

    cout, cin = w_ref.shape
    if cin <= 8:
        # Tiny contraction: VPU broadcast-MAC avoids an <1%-utilized MXU pass.
        w = w_ref[...]
        y = w[:, 0:1] * pooled[0:1, :]
        for ci in range(1, cin):
            y = y + w[:, ci : ci + 1] * pooled[ci : ci + 1, :]
    else:
        # Clean 2D matmul: (Cout, Cin) @ (Cin, TM) -> (Cout, TM), f32 acc.
        y = jnp.dot(w_ref[...], pooled, preferred_element_type=jnp.float32)

    o_ref[...] = (y + b).astype(o_ref.dtype)


def _pick_m_tile(m_total, cin, dtype_bytes=4, target_block_bytes=4 << 20):
    """Largest lane-dense (multiple-of-128, preferably >=512) divisor of the
    flattened spatial extent whose input block stays a few MiB (fits v7x's
    64 MiB VMEM with double buffering and amortizes per-step overhead)."""
    for tm in (8192, 4096, 2048, 1024, 512, 256, 128):
        if m_total % tm == 0 and 4 * cin * tm * dtype_bytes <= target_block_bytes:
            return tm
    return m_total  # small inputs: one full-spatial block per batch element


def down_forward(x_nchw, weight, bias, *, m_tile=None):
    """x_nchw: (N, Cin, H, W) f32 -> (N, Cout, H//2, W//2) f32.

    `weight` is in PyTorch Conv2d layout: (Cout, Cin) or (Cout, Cin, 1, 1).
    """
    n, cin, h, w = x_nchw.shape
    cout = weight.shape[0]
    ho, wo = h // 2, w // 2
    # PyTorch MaxPool2d floors odd spatial dims: drop trailing row/column.
    if (h % 2) or (w % 2):
        x_nchw = x_nchw[:, :, : 2 * ho, : 2 * wo]
    m = ho * wo

    # Single relayout pass: NCHW -> (N, tap, Cin, Ho*Wo). The surrounding
    # reshapes are free (contiguous); only one transpose touches HBM, and the
    # output needs no transpose at all.
    x6 = x_nchw.reshape(n, cin, ho, 2, wo, 2)
    xt = jnp.transpose(x6, (0, 3, 5, 1, 2, 4)).reshape(n, 4, cin, m)

    w2 = weight.reshape(cout, cin)        # (Cout, Cin, 1, 1) -> (Cout, Cin)
    b2 = bias.reshape(cout, 1)

    tm = m_tile or _pick_m_tile(m, cin, dtype_bytes=x_nchw.dtype.itemsize)
    assert m % tm == 0
    grid = (n, m // tm)

    out_flat = pl.pallas_call(
        down_kernel,
        out_shape=jax.ShapeDtypeStruct((n, cout, m), x_nchw.dtype),
        grid_spec=pltpu.PrefetchScalarGridSpec(
            num_scalar_prefetch=0,
            grid=grid,
            in_specs=[
                pl.BlockSpec((pl.Squeezed(), 4, cin, tm),
                             lambda ni, mi: (ni, 0, 0, mi)),
                pl.BlockSpec((cout, cin), lambda ni, mi: (0, 0)),
                pl.BlockSpec((cout, 1), lambda ni, mi: (0, 0)),
            ],
            out_specs=pl.BlockSpec((pl.Squeezed(), cout, tm),
                                   lambda ni, mi: (ni, 0, mi)),
        ),
        compiler_params=pltpu.CompilerParams(
            dimension_semantics=("parallel", "parallel"),
            vmem_limit_bytes=32 * 1024 * 1024,
        ),
    )(xt, w2, b2)

    # Free reshape: output is already channel-major (NCHW-flat).
    return out_flat.reshape(n, cout, ho, wo)


def down_reference(x_nchw, weight, bias):
    """Plain-JAX reference: MaxPool2d(2) then 1x1 conv (PyTorch weight layout)."""
    n, cin, h, w = x_nchw.shape
    cout = weight.shape[0]
    ho, wo = h // 2, w // 2
    x6 = x_nchw[:, :, : 2 * ho, : 2 * wo].reshape(n, cin, ho, 2, wo, 2)
    pooled = jnp.max(x6, axis=(3, 5))                         # (N, Cin, Ho, Wo)
    w2 = weight.reshape(cout, cin)
    y = jnp.einsum("nihw,oi->nohw", pooled, w2)
    return y + bias[None, :, None, None]


if __name__ == "__main__":
    N, C_IN, C_OUT, H, W = 2, 4, 8, 16, 16

    key = jax.random.PRNGKey(0)
    kx, kw, kb = jax.random.split(key, 3)

    x = jax.random.normal(kx, (N, C_IN, H, W), dtype=jnp.float32)

    # Deterministic init for the 1x1 projection, PyTorch (Cout, Cin) layout.
    bound = 1.0 / (C_IN ** 0.5)
    weight = jax.random.uniform(kw, (C_OUT, C_IN), jnp.float32, -bound, bound)
    bias = jax.random.uniform(kb, (C_OUT,), jnp.float32, -bound, bound)

    out = down_forward(x, weight, bias)
    out = jax.block_until_ready(out)

    ref = down_reference(x, weight, bias)
    assert out.shape == (N, C_OUT, H // 2, W // 2), out.shape
    assert jnp.allclose(out, ref, atol=1e-5, rtol=1e-5), "mismatch vs reference"

    print("KERNEL_OK")
</pallas_src>

<mosaic_0001>
module attributes {stable_mosaic.version = 11 : i64} {
  func.func @down_kernel(%arg0: i32, %arg1: i32, %arg2: memref<1x4x4x64xf32, #tpu.memory_space<vmem>>, %arg3: memref<8x4xf32, #tpu.memory_space<vmem>>, %arg4: memref<8x1xf32, #tpu.memory_space<vmem>>, %arg5: memref<1x8x64xf32, #tpu.memory_space<vmem>>) attributes {dimension_semantics = [#tpu.dimension_semantics<parallel>, #tpu.dimension_semantics<parallel>], iteration_bounds = array<i64: 2, 1>, scalar_prefetch = 0 : i64, scratch_operands = 0 : i64, tpu.core_type = #tpu.core_type<tc>, window_params = [{transform_indices = @transform_0, window_bounds = array<i64: 1, 4, 4, 64>}, {pipeline_mode = #tpu.pipeline_mode<synchronous>, transform_indices = @transform_1, window_bounds = array<i64: 8, 4>}, {pipeline_mode = #tpu.pipeline_mode<synchronous>, transform_indices = @transform_2, window_bounds = array<i64: 8, 1>}, {transform_indices = @transform_3, window_bounds = array<i64: 1, 8, 64>}]} {
    %c0 = arith.constant 0 : index
    %c0_0 = arith.constant 0 : index
    %0 = vector.load %arg4[%c0, %c0_0] : memref<8x1xf32, #tpu.memory_space<vmem>>, vector<8x1xf32>
    %c0_1 = arith.constant 0 : index
    %c0_2 = arith.constant 0 : index
    %c0_3 = arith.constant 0 : index
    %c0_4 = arith.constant 0 : index
    %1 = vector.load %arg2[%c0_1, %c0_2, %c0_3, %c0_4] : memref<1x4x4x64xf32, #tpu.memory_space<vmem>>, vector<1x1x4x64xf32>
    %2 = vector.shape_cast %1 : vector<1x1x4x64xf32> to vector<4x64xf32>
    %c0_5 = arith.constant 0 : index
    %c1 = arith.constant 1 : index
    %c0_6 = arith.constant 0 : index
    %c0_7 = arith.constant 0 : index
    %3 = vector.load %arg2[%c0_5, %c1, %c0_6, %c0_7] : memref<1x4x4x64xf32, #tpu.memory_space<vmem>>, vector<1x1x4x64xf32>
    %4 = vector.shape_cast %3 : vector<1x1x4x64xf32> to vector<4x64xf32>
    %5 = arith.maximumf %2, %4 : vector<4x64xf32>
    %c0_8 = arith.constant 0 : index
    %c2 = arith.constant 2 : index
    %c0_9 = arith.constant 0 : index
    %c0_10 = arith.constant 0 : index
    %6 = vector.load %arg2[%c0_8, %c2, %c0_9, %c0_10] : memref<1x4x4x64xf32, #tpu.memory_space<vmem>>, vector<1x1x4x64xf32>
    %7 = vector.shape_cast %6 : vector<1x1x4x64xf32> to vector<4x64xf32>
    %c0_11 = arith.constant 0 : index
    %c3 = arith.constant 3 : index
    %c0_12 = arith.constant 0 : index
    %c0_13 = arith.constant 0 : index
    %8 = vector.load %arg2[%c0_11, %c3, %c0_12, %c0_13] : memref<1x4x4x64xf32, #tpu.memory_space<vmem>>, vector<1x1x4x64xf32>
    %9 = vector.shape_cast %8 : vector<1x1x4x64xf32> to vector<4x64xf32>
    %10 = arith.maximumf %7, %9 : vector<4x64xf32>
    %11 = arith.maximumf %5, %10 : vector<4x64xf32>
    %c0_14 = arith.constant 0 : index
    %c0_15 = arith.constant 0 : index
    %12 = vector.load %arg3[%c0_14, %c0_15] : memref<8x4xf32, #tpu.memory_space<vmem>>, vector<8x4xf32>
    %13 = vector.extract_strided_slice %12 {offsets = [0, 0], sizes = [8, 1], strides = [1, 1]} : vector<8x4xf32> to vector<8x1xf32>
    %14 = vector.extract_strided_slice %11 {offsets = [0, 0], sizes = [1, 64], strides = [1, 1]} : vector<4x64xf32> to vector<1x64xf32>
    %15 = vector.broadcast %13 : vector<8x1xf32> to vector<8x64xf32>
    %16 = vector.broadcast %14 : vector<1x64xf32> to vector<8x64xf32>
    %17 = arith.mulf %15, %16 : vector<8x64xf32>
    %18 = vector.extract_strided_slice %12 {offsets = [0, 1], sizes = [8, 1], strides = [1, 1]} : vector<8x4xf32> to vector<8x1xf32>
    %19 = vector.extract_strided_slice %11 {offsets = [1, 0], sizes = [1, 64], strides = [1, 1]} : vector<4x64xf32> to vector<1x64xf32>
    %20 = vector.broadcast %18 : vector<8x1xf32> to vector<8x64xf32>
    %21 = vector.broadcast %19 : vector<1x64xf32> to vector<8x64xf32>
    %22 = arith.mulf %20, %21 : vector<8x64xf32>
    %23 = arith.addf %17, %22 : vector<8x64xf32>
    %24 = vector.extract_strided_slice %12 {offsets = [0, 2], sizes = [8, 1], strides = [1, 1]} : vector<8x4xf32> to vector<8x1xf32>
    %25 = vector.extract_strided_slice %11 {offsets = [2, 0], sizes = [1, 64], strides = [1, 1]} : vector<4x64xf32> to vector<1x64xf32>
    %26 = vector.broadcast %24 : vector<8x1xf32> to vector<8x64xf32>
    %27 = vector.broadcast %25 : vector<1x64xf32> to vector<8x64xf32>
    %28 = arith.mulf %26, %27 : vector<8x64xf32>
    %29 = arith.addf %23, %28 : vector<8x64xf32>
    %30 = vector.extract_strided_slice %12 {offsets = [0, 3], sizes = [8, 1], strides = [1, 1]} : vector<8x4xf32> to vector<8x1xf32>
    %31 = vector.extract_strided_slice %11 {offsets = [3, 0], sizes = [1, 64], strides = [1, 1]} : vector<4x64xf32> to vector<1x64xf32>
    %32 = vector.broadcast %30 : vector<8x1xf32> to vector<8x64xf32>
    %33 = vector.broadcast %31 : vector<1x64xf32> to vector<8x64xf32>
    %34 = arith.mulf %32, %33 : vector<8x64xf32>
    %35 = arith.addf %29, %34 : vector<8x64xf32>
    %36 = vector.broadcast %0 : vector<8x1xf32> to vector<8x64xf32>
    %37 = arith.addf %35, %36 : vector<8x64xf32>
    %c0_16 = arith.constant 0 : index
    %c0_17 = arith.constant 0 : index
    %c0_18 = arith.constant 0 : index
    %38 = vector.load %arg5[%c0_16, %c0_17, %c0_18] : memref<1x8x64xf32, #tpu.memory_space<vmem>>, vector<1x8x64xf32>
    %39 = vector.shape_cast %38 : vector<1x8x64xf32> to vector<8x64xf32>
    %40 = vector.shape_cast %37 : vector<8x64xf32> to vector<1x8x64xf32>
    tpu.vector_store %arg5[%c0_16, %c0_17, %c0_18], %40 {strides = array<i32>} : memref<1x8x64xf32, #tpu.memory_space<vmem>>, vector<1x8x64xf32>,
    return
  }
  func.func @transform_0(%arg0: i32, %arg1: i32) -> (i32, i32, i32, i32) {
    %c0_i32 = arith.constant 0 : i32
    %c0_i32_0 = arith.constant 0 : i32
    %c0_i32_1 = arith.constant 0 : i32
    return %arg0, %c0_i32, %c0_i32_0, %arg1 : i32, i32, i32, i32
  }
  func.func @transform_1(%arg0: i32, %arg1: i32) -> (i32, i32) {
    %c0_i32 = arith.constant 0 : i32
    %c0_i32_0 = arith.constant 0 : i32
    %c0_i32_1 = arith.constant 0 : i32
    return %c0_i32, %c0_i32_0 : i32, i32
  }
  func.func @transform_2(%arg0: i32, %arg1: i32) -> (i32, i32) {
    %c0_i32 = arith.constant 0 : i32
    %c0_i32_0 = arith.constant 0 : i32
    %c0_i32_1 = arith.constant 0 : i32
    return %c0_i32, %c0_i32_0 : i32, i32
  }
  func.func @transform_3(%arg0: i32, %arg1: i32) -> (i32, i32, i32) {
    %c0_i32 = arith.constant 0 : i32
    %c0_i32_0 = arith.constant 0 : i32
    return %arg0, %c0_i32, %arg1 : i32, i32, i32
  }
}

</mosaic_0001>

<bundles_post_ra>
// kernel: tpu_custom_call.1
= control target key start
LH: loop header
LB: loop body
LE: loop exit
PB: predicated region body
PF: predicated region fallthrough
CT: control target
= control target key end

     0   :  { %8 = vsyncpa [#allocation3], 0  ;;  %s713_s0 = inlined_call_operand.hbm [shape: f32[2,4,4,64], index: 0, kind: input, shape index: {}]   ;;  %s714_s1 = inlined_call_operand.vmem [shape: f32[8,4], index: 1, kind: input, shape index: {}]   ;;  %s715_s2 = inlined_call_operand.vmem [shape: f32[8,1], index: 2, kind: input, shape index: {}]   ;;  %s716_s3 = inlined_call_operand.hbm [shape: f32[2,8,64], index: 3, kind: output, shape index: {}]  }
   0x1   :  { %10 = vsyncpa [#allocation3 + $0x1], 0 }
   0x2   :  { %11 = vsyncpa [#allocation4], 0 }
   0x3   :  { %13 = vsyncpa [#allocation4 + $0x1], 0  ;;  %s586_s12 = smov 0   ;;  %s588_s13 = smov 0  }
   0x4   :  { %s590_s14 = smov 0   ;;  %s592_s15 = smov 0  }
   0x5   :  { %s594_s16 = smov 0   ;;  %s596_s17 = smov 0  }
   0x6 LB: > { %s354_s18 = sadd.s32 4294967295, %s558_s17   ;;  %s355_s19 = sadd.s32 4294967294, %s558_s17   ;;  %s558_s17 = sphi %s596_s17, %s19_s17   ;;  %s554_s16 = sphi %s594_s16, %s725_s16   ;;  %s550_s15 = sphi %s592_s15, %s724_s15   ;;  %s546_s14 = sphi %s590_s14, %s723_s14   ;;  %s542_s13 = sphi %s588_s13, %s722_s13   ;;  %s538_s12 = sphi %s586_s12, %s721_s12  }
   0x7   : > { %s31_s20 = sadd.s32 1, %s554_s16  ;;  %s40_s21 = sadd.s32 1, %s546_s14 }
   0x8   : > { %p33_p0 = scmp.ge.s32.totalorder %s31_s20, 2  ;;  %p47_p1 = scmp.ne.s32.totalorder %s546_s14, %s542_s13 }
   0x9   : > { %p48_p2 = scmp.eq.s32.totalorder %s558_s17, 0  ;;  %p53_p3 = scmp.ne.s32.totalorder %s542_s13, %s538_s12 }
   0xa   : > { %s727_s20 = smov (%p33_p0, %s31_s20), 0  ;;  %p54_p5 = scmp.eq.s32.totalorder %s354_s18, 0 }
   0xb   : > { %p627_p4 = por %p48_p2, %p47_p1  ;;  %s35_s23 = ssub.s32 %s554_s16, %s727_s20 }
   0xc   : > { %p121_p6 = scmp.eq.s32.totalorder %s354_s18, 1  ;;  %p38_p7 = scmp.eq.s32.totalorder %s35_s23, 0 }
   0xd   : > { %p633_p8 = por %p54_p5, %p53_p3  ;;  %p127_p10 = scmp.eq.s32.totalorder %s355_s19, 1 }
   0xe   : > { %p637_p9 = por %p121_p6, %p47_p1  ;;  %p357_p12 = scmp.ge.s32.totalorder %s558_s17, 2 }
   0xf   : > { %s642_s26 = scalar_select %p38_p7, %s546_s14, %s40_s21  }
  0x10   : > { %p644_p11 = por %p127_p10, %p53_p3  ;;  %p384_p13 = scmp.lt.s32.totalorder %s558_s17, 2 }
  0x11   : > { %s153_s28 = sand.u32 1, %s546_s14   ;;  %s371_s30 = sshll.u32 %s554_s16, 4 }
  0x12   : > { %s358_s29 = sshll.u32 %s153_s28, 4  ;;  %s163_s6 = scalar_lea.hbm %s713_s0, %s371_s30 }
  0x13   : > { %s157_s7 = scalar_lea.vmem [#allocation2], %s358_s29  ;;  %s164_s9 = sshll.u32 %s163_s6, 4  ;;  %s165_s9 = int_to_ptr.hbm [resolvable:$true] %s164_s9 }
  0x14   : > { %s166_s8 = sshll.u32 %s157_s7, 4  ;;  %p377_p0 = pnand %p384_p13, %p627_p4  ;;  %s167_s8 = int_to_ptr.vmem [resolvable:$true] %s166_s8 }
  0x15   : > { %p361_p1 = scmp.ge.s32.totalorder %s558_s17, 1  ;;  %s154_s10 = scalar_lea.sflag [#allocation3], %s153_s28 }
  0x16   : > { %s560_s11 = smov 64   ;;  %s561_s18 = smov 4  }
  0x17   : > { %379 = dma.hbm_to_vmem [thread:$0]  (!%p377_p0), %s165_s9, 256, %s167_s8, %s154_s10, %s560_s11, %s560_s11, %s561_s18  }
  0x18   : > { %p174_p2 = scmp.lt.s32.totalorder %s558_s17, 3 }
  0x1a   : > { %p175_p3 = pnand %p361_p1, %p174_p2 }
  0x1b   : > { %s660_s19 = sand.u32 (!%p175_p3), 1, %s542_s13  }
  0x1c   : > { %178 = sbr.rel (%p175_p3) target bundleno = 173 (0xad), region = 32  ;;  %s362_s21 = sshll.u32 (!%p175_p3), %s660_s19, 4 }
  0x1d   : > { %s181_s23 = scalar_lea.sflag (!%p175_p3), [#allocation3], %s660_s19  ;;  %s184_s29 = scalar_lea.vmem (!%p175_p3), [#allocation2], %s362_s21 }
  0x21   : > { %529 = dma.done.wait (%p633_p8), %s181_s23, 256  }
  0x22   : > { %531 = vsyncadd (%p633_p8), %s181_s23, 4294967040  ;;  %v562_v0 = vmov 0   ;;  %v563_v1 = vmov 2   ;;  %v219_v2 = vld [vmem:[%s714_s1] sm:$0xff]  ;;  %v564_v4 = vmov 1   ;;  %v565_v5 = vmov 3  }
  0x23   : > { %440 = vset.pattern.permute.xlu0 %v562_v0  ;;  %442 = vset.pattern.permute.xlu1 %v563_v1  ;;  %v208_v3 = vld [vmem:[%s715_s2] sm:$0xff]  ;;  %v365_v8 = vld [vmem:[%s184_s29 + $0x8] sm:$0xf]  ;;  %v366_v9 = vld [vmem:[%s184_s29 + $0xc] sm:$0xf]  ;;  %s363_s24 = sshll.u32 %s660_s19, 3 }
  0x24   : > { %444 = vset.pattern.permute.xlu2 %v562_v0  ;;  %222 = vperm.xlu0 %440, %v219_v2   ;;  %v209_v6 = vld [vmem:[%s184_s29] sm:$0xf]  ;;  %v364_v7 = vld [vmem:[%s184_s29 + $0x4] sm:$0xf]  ;;  %v217_v11 = vmax.f32 %v365_v8, %v366_v9  ;;  %s368_s5 = sshll.u32 %s550_s15, 3  ;;  %s207_s9 = scalar_lea.vmem [#allocation5], %s363_s24 }
  0x25   : > { %235 = vperm.xlu1 %442, %v219_v2   ;;  %250 = vperm.xlu2 %444, %v208_v3   ;;  %v212_v10 = vmax.f32 %v209_v6, %v364_v7  ;;  %s268_s8 = scalar_lea.hbm %s716_s3, %s368_s5  ;;  %s270_s10 = sshll.u32 %s207_s9, 4  ;;  %vm254_vm0 = vcmask 523264   ;;  %s271_s10 = int_to_ptr.vmem [resolvable:$true] %s270_s10 }
  0x26   : > { %s272_s11 = sshll.u32 %s268_s8, 4  ;;  %s257_s15 = scalar_lea.sflag [#allocation4], %s660_s19  ;;  %s273_s11 = int_to_ptr.hbm [resolvable:$true] %s272_s11 }
  0x27   : > { %v218_v14 = vmax.f32 %v212_v10, %v217_v11  ;;  %s490_s18 = sshra.s32 %s273_s11, 4  ;;  %s496_s22 = scalar_lea.hbm %s716_s3, 16  ;;  %s491_s18 = int_to_ptr.hbm [resolvable:$true] %s490_s18 }
  0x28   : > { %s492_s21 = scalar_lea.hbm %s491_s18, 8  ;;  %p497_p7 = scmp.lt.s32.totalorder %s491_s18, %s716_s3 }
  0x29   : > { %v225_v15 = vperm.slane %v218_v14, 0  ;;  %v231_v16 = vperm.slane %v218_v14, 1  ;;  %v238_v17 = vperm.slane %v218_v14, 2  ;;  %v245_v18 = vperm.slane %v218_v14, 3  ;;  %p493_p4 = scmp.ne.s32.totalorder %s491_s18, %s492_s21  ;;  %p498_p8 = scmp.lt.s32.totalorder %s496_s22, %s492_s21 }
  0x2b   : > { %p494_p5 = pnand %p493_p4, %p637_p9  ;;  %p499_p10 = por %p498_p8, %p497_p7 }
  0x2c   : > { %441 = vset.pattern.permute.xlu0 %v564_v4 }
  0x2d   : > { %443 = vset.pattern.permute.xlu1 %v565_v5  ;;  %228 = vperm.xlu0 %441, %v219_v2   ;;  %p495_p6 = pneg %p494_p5 }
  0x2e   : > { %242 = vperm.xlu1 %443, %v219_v2  }
  0x2f   : > { %p500_p13 = pnand %p499_p10, %p495_p6 }
  0x35   : > { %445 = vset.pattern.permute.xlu0 %v562_v0 }
  0x7f   : > { %v251_v27 = vpop.permute.xlu2 %250 }
  0x96   : > { %v223_v12 = vpop.permute.xlu0 %222 }
  0x97   : > { %v236_v13 = vpop.permute.xlu1 %235  ;;  %v226_v21 = vmul.f32 %v225_v15, %v223_v12 }
  0x98   : > { %v239_v23 = vmul.f32 %v238_v17, %v236_v13 }
  0x9f   : > { %v229_v19 = vpop.permute.xlu0 %228 }
  0xa0   : > { %v243_v20 = vpop.permute.xlu1 %242  ;;  %v232_v22 = vmul.f32 %v231_v16, %v229_v19 }
  0xa1   : > { %v246_v25 = vmul.f32 %v245_v18, %v243_v20 }
  0xa2   : > { %v233_v24 = vadd.f32 %v232_v22, %v226_v21 }
  0xa4   : > { %v240_v26 = vadd.f32 %v239_v23, %v233_v24 }
  0xa6   : > { %v247_v28 = vadd.f32 %v246_v25, %v240_v26 }
  0xa8   : > { %v253_v29 = vadd.f32 %v251_v27, %v247_v28 }
  0xaa   : > { %255 = vst.msk [vmem:[%s207_s9] sm:$0xff] %vm254_vm0, %v253_v29 }
  0xab   : > { %503 = shalt.err (!%p500_p13)
}
  0xac   : > { %374 = dma.vmem_to_hbm [thread:$0]  (%p637_p9), %s271_s10, 128, %s273_s11, %s257_s15  }
  0xad PF: > { %s284_s19 = sand.u32 1, %s538_s12   ;;  %p381_p0 = pnand %p357_p12, %p644_p11 }
  0xae   : > { %s285_s4 = scalar_lea.sflag [#allocation4], %s284_s19 }
  0xaf   : > { %p382_p1 = pneg %p381_p0 }
  0xb1   : > { %533 = dma.done.wait (%p382_p1), %s285_s4, 128  }
  0xb2   : > { %535 = vsyncadd (%p382_p1), %s285_s4, 4294967168  ;;  %s19_s17 = sadd.s32 1, %s558_s17   ;;  %s721_s12 = smov %s542_s13 }
  0xb3   : > { %p16_p2 = scmp.ge.s32.totalorder %s19_s17, 4   ;;  %s722_s13 = smov %s546_s14 }
  0xb4   : > { %s723_s14 = smov %s642_s26  ;;  %s724_s15 = smov %s554_s16 }
  0xb5   : > { %s725_s16 = smov %s727_s20  ;;  %18 = sbr.rel (!%p16_p2) target bundleno = 6 (0x6), region = 80 }
  0xba   :  { %291 = vsyncpa [#allocation3], 1 }
  0xbb   :  { %293 = vsyncpa [#allocation3 + $0x1], 1 }
  0xbc   :  { %294 = vsyncpa [#allocation4], 1 }
  0xbd   :  { %296 = vsyncpa [#allocation4 + $0x1], 1 }

</bundles_post_ra>
